<compile_context>
chip_gen: v6e
topology: v6e:2x2x1
jax: 0.10.0
libtpu: 0.0.40
codegen_flags: <defaults>
</compile_context>

<pallas_src>
import functools

import jax
import jax.numpy as jnp
from jax.experimental import pallas as pl
from jax.experimental.pallas import tpu as pltpu

_LANE = 128                                  # vreg lane width
_SUBLANE = 8                                 # vreg sublane width
_TINY = float(jnp.finfo(jnp.float32).tiny)   # guards all-zero / garbage rows only


def _round_up(x, m):
    return ((x + m - 1) // m) * m


def _vmem_budget():
    """Per-generation VMEM budget (bytes); conservative fallback if unknown."""
    cap = None
    try:
        info = pltpu.get_tpu_info()
        for name in ("vmem_capacity_bytes", "vmem_size_bytes", "vmem_bytes"):
            cap = getattr(info, name, None)
            if cap:
                break
    except Exception:
        cap = None
    if not cap:
        cap = 64 * 1024 * 1024            # safe assumption (v7x)
    return max(min(int(cap) * 3 // 4, 112 * 1024 * 1024), 16 * 1024 * 1024)


def _pick_tile(n):
    # <=256 : one full-extent block (layout-legal for any n, tiny problem).
    # 257..512 : 256 so a "parallel" axis has >=2 steps (v7x megacore busy).
    # >512  : 512 (amortizes grid overhead / re-streaming; still >=2 steps).
    if n <= 256:
        return n
    if n <= 512:
        return 256
    return 512


def _footprint_bytes(tm, tn, h, in_itemsize):
    # double-buffered input/output blocks + in-kernel f32/bf16 temporaries.
    io = 2 * (tm + tn) * h * in_itemsize + 2 * tm * tn * 4
    tmp = (tm + tn) * h * (4 + 2) + tm * tn * 4
    return io + tmp


# ----------------------------- kernel ----------------------------------------


def _cosine_kernel(v_ref, t_ref, o_ref, *, matmul_dtype, precision):
    # v_ref: [tm, H], t_ref: [tn, H] (raw, unnormalized). Norms are computed in
    # the prologue (f32) and the operands are scaled BEFORE the matmul-dtype
    # cast, matching reference normalize-then-matmul ordering.  The rsqrt goes
    # to the EUP and the scaling multiplies are VPU filler under the MXU.
    v = v_ref[...].astype(jnp.float32)
    t = t_ref[...].astype(jnp.float32)
    v = v * jax.lax.rsqrt(jnp.maximum(jnp.sum(v * v, axis=1, keepdims=True), _TINY))
    t = t * jax.lax.rsqrt(jnp.maximum(jnp.sum(t * t, axis=1, keepdims=True), _TINY))
    # Contract the last dim of BOTH operands (no transposed copy of t).
    o_ref[...] = jax.lax.dot_general(
        v.astype(matmul_dtype), t.astype(matmul_dtype),
        dimension_numbers=(((1,), (1,)), ((), ())),
        preferred_element_type=jnp.float32,
        precision=precision)


# ----------------------------- wrapper ----------------------------------------


def cosine_similarity_pallas(v_emb, t_emb, *, matmul_dtype=jnp.bfloat16,
                             precision=None):
    """Row-normalize v_emb [Nv,H] and t_emb [Nt,H]; return v_n @ t_n.T (f32)."""
    nv, h = v_emb.shape
    nt, h2 = t_emb.shape
    assert h == h2

    budget = _vmem_budget()
    itemsize = max(jnp.dtype(v_emb.dtype).itemsize, jnp.dtype(t_emb.dtype).itemsize)

    tm = _pick_tile(nv)
    tn = _pick_tile(nt)
    # Shrink tiles (keeping 8/128 alignment) until the per-step footprint fits.
    while (_footprint_bytes(tm, tn, h, itemsize) > budget
           and (tm > _SUBLANE or tn > _LANE)):
        if tm >= tn and tm > _SUBLANE:
            tm = max(_round_up(tm // 2, _SUBLANE), _SUBLANE)
        elif tn > _LANE:
            tn = max(_round_up(tn // 2, _LANE), _LANE)
        else:
            tm = max(_round_up(tm // 2, _SUBLANE), _SUBLANE)
    # TODO(synk): K-tiled fallback (3rd "arbitrary" grid axis + f32 accumulator)
    # for extreme hidden sizes where even minimal full-H tiles exceed VMEM.

    gi = pl.cdiv(nv, tm)   # blocks over Nv
    gj = pl.cdiv(nt, tn)   # blocks over Nt

    # The operand indexed by the INNER grid axis is re-streamed (outer-1) extra
    # times.  Pick the axis order that minimizes that extra HBM traffic.
    swap = (gi - 1) * nt > (gj - 1) * nv
    if not swap:
        grid = (gi, gj)
        v_map = lambda i, j: (i, 0)
        t_map = lambda i, j: (j, 0)
        o_map = lambda i, j: (i, j)
    else:
        grid = (gj, gi)
        v_map = lambda j, i: (i, 0)
        t_map = lambda j, i: (j, 0)
        o_map = lambda j, i: (i, j)

    return pl.pallas_call(
        functools.partial(_cosine_kernel, matmul_dtype=matmul_dtype,
                          precision=precision),
        out_shape=jax.ShapeDtypeStruct((nv, nt), jnp.float32),
        grid=grid,
        in_specs=[pl.BlockSpec((tm, h), v_map),
                  pl.BlockSpec((tn, h), t_map)],
        out_specs=pl.BlockSpec((tm, tn), o_map),
        compiler_params=pltpu.CompilerParams(
            dimension_semantics=("parallel", "parallel"),
            vmem_limit_bytes=budget),
    )(v_emb, t_emb)


# ----------------------------- module ----------------------------------------


class SimilarityModelA:
    """JAX/Pallas re-implementation of the PyTorch module's forward pass.

    The visual_features_extractor (called on integer object ids, output
    squeezed on dim 1) is modeled as an embedding table [nobjects, 1, H];
    text_encoder is an embedding table [vocab, H].  Tables are stored at their
    natural size (no padding): the kernel uses full-extent hidden-dim blocks
    and pl.cdiv row grids, so no wrapper-side pad/slice HBM round trips occur.
    """

    def __init__(self, vocab_size, hidden_size, nobjects, key, init_range=None,
                 matmul_dtype=jnp.bfloat16, precision=None):
        self.hidden_size = hidden_size
        self.nobjects = nobjects
        self.nwords = vocab_size
        self.matmul_dtype = matmul_dtype
        self.precision = precision

        k_vis, k_txt = jax.random.split(key)
        self.visual_table = jax.random.normal(
            k_vis, (nobjects, 1, hidden_size), jnp.float32)
        if init_range:
            self.text_table = jax.random.uniform(
                k_txt, (vocab_size, hidden_size),
                minval=-init_range, maxval=init_range, dtype=jnp.float32)
        else:
            self.text_table = jax.random.normal(
                k_txt, (vocab_size, hidden_size), jnp.float32)

    def forward(self, visual_input, text_input):
        # Glue: embedding lookups (gather) in plain JAX.
        # TODO(synk): fuse the gathers into the Pallas kernel (scalar-prefetched
        # ids + per-row DMA from the HBM tables) to drop these intermediates.
        v_ = jnp.squeeze(jnp.take(self.visual_table, visual_input, axis=0),
                         axis=1)                                  # [Nv, H]
        t_ = jnp.take(self.text_table, text_input, axis=0)        # [Nt, H]
        # Hot path (L2 normalize + cosine matmul) in one fused Pallas kernel.
        return cosine_similarity_pallas(v_, t_, matmul_dtype=self.matmul_dtype,
                                        precision=self.precision)

    # TODO(synk): get_production_probs / get_comprehension_probs (LogSoftmax
    # glue), supervised_loss / cross_situational_loss (host-side numpy
    # randomness + Python loops) and get_embeddings are not kernelized.


def _reference_forward(model, visual_input, text_input):
    v_ = jnp.squeeze(jnp.take(model.visual_table, visual_input, axis=0), axis=1)
    t_ = jnp.take(model.text_table, text_input, axis=0)
    v_ = v_ / jnp.linalg.norm(v_, axis=1, keepdims=True)
    t_ = t_ / jnp.linalg.norm(t_, axis=1, keepdims=True)
    return v_ @ t_.T


if __name__ == "__main__":
    key = jax.random.PRNGKey(0)
    k_model, k_vis_idx, k_txt_idx = jax.random.split(key, 3)

    vocab_size = 16
    hidden_size = 32
    nobjects = 10

    # Default (bf16 MXU operands, f32 accumulation) model.
    model = SimilarityModelA(vocab_size, hidden_size, nobjects,
                             key=k_model, init_range=0.1)

    visual_input = jax.random.randint(k_vis_idx, (8,), 0, nobjects)
    text_input = jax.random.randint(k_txt_idx, (8,), 0, vocab_size)

    ref = _reference_forward(model, visual_input, text_input)

    sims = jax.block_until_ready(model.forward(visual_input, text_input))
    assert sims.shape == (8, 8)
    assert jnp.allclose(sims, ref, atol=2e-2, rtol=2e-2)

    # f32-operand / HIGHEST-precision path: tight correctness check.
    model_f32 = SimilarityModelA(vocab_size, hidden_size, nobjects,
                                 key=k_model, init_range=0.1,
                                 matmul_dtype=jnp.float32,
                                 precision=jax.lax.Precision.HIGHEST)
    sims_f32 = jax.block_until_ready(model_f32.forward(visual_input, text_input))
    assert jnp.allclose(sims_f32, ref, atol=1e-5, rtol=1e-5)

    # Multi-tile path: grid (2,2) with a partial lane-tile on Nt=640 and the
    # swapped streaming order; bf16 operands.
    k_v2, k_t2 = jax.random.split(jax.random.PRNGKey(1))
    v_big = jax.random.normal(k_v2, (512, 256), jnp.float32)
    t_big = jax.random.normal(k_t2, (640, 256), jnp.float32)
    sims_big = jax.block_until_ready(cosine_similarity_pallas(v_big, t_big))
    ref_big = ((v_big / jnp.linalg.norm(v_big, axis=1, keepdims=True))
               @ (t_big / jnp.linalg.norm(t_big, axis=1, keepdims=True)).T)
    assert sims_big.shape == (512, 640)
    assert jnp.allclose(sims_big, ref_big, atol=2e-2, rtol=2e-2)

    # Partial row-tile + unaligned Nv/Nt/H, exact f32 path.
    k_v3, k_t3 = jax.random.split(jax.random.PRNGKey(2))
    v3 = jax.random.normal(k_v3, (300, 96), jnp.float32)
    t3 = jax.random.normal(k_t3, (200, 96), jnp.float32)
    sims3 = jax.block_until_ready(cosine_similarity_pallas(
        v3, t3, matmul_dtype=jnp.float32,
        precision=jax.lax.Precision.HIGHEST))
    ref3 = ((v3 / jnp.linalg.norm(v3, axis=1, keepdims=True))
            @ (t3 / jnp.linalg.norm(t3, axis=1, keepdims=True)).T)
    assert sims3.shape == (300, 200)
    assert jnp.allclose(sims3, ref3, atol=1e-5, rtol=1e-5)

    print("KERNEL_OK")
</pallas_src>

<mosaic_0001>
module attributes {stable_mosaic.version = 11 : i64} {
  func.func @_cosine_kernel(%arg0: i32, %arg1: i32, %arg2: memref<8x32xf32, #tpu.memory_space<vmem>>, %arg3: memref<8x32xf32, #tpu.memory_space<vmem>>, %arg4: memref<8x8xf32, #tpu.memory_space<vmem>>) attributes {dimension_semantics = [#tpu.dimension_semantics<parallel>, #tpu.dimension_semantics<parallel>], iteration_bounds = array<i64: 1, 1>, scalar_prefetch = 0 : i64, scratch_operands = 0 : i64, tpu.core_type = #tpu.core_type<tc>, window_params = [{transform_indices = @transform_0, window_bounds = array<i64: 8, 32>}, {transform_indices = @transform_1, window_bounds = array<i64: 8, 32>}, {transform_indices = @transform_2, window_bounds = array<i64: 8, 8>}]} {
    %c0 = arith.constant 0 : index
    %c0_0 = arith.constant 0 : index
    %0 = vector.load %arg2[%c0, %c0_0] : memref<8x32xf32, #tpu.memory_space<vmem>>, vector<8x32xf32>
    %c0_1 = arith.constant 0 : index
    %c0_2 = arith.constant 0 : index
    %1 = vector.load %arg3[%c0_1, %c0_2] : memref<8x32xf32, #tpu.memory_space<vmem>>, vector<8x32xf32>
    %2 = arith.mulf %0, %0 : vector<8x32xf32>
    %cst = arith.constant dense<0.000000e+00> : vector<8xf32>
    %3 = vector.multi_reduction <add>, %2, %cst [1] : vector<8x32xf32> to vector<8xf32>
    %4 = vector.shape_cast %3 : vector<8xf32> to vector<8x1xf32>
    %cst_3 = arith.constant 1.17549435E-38 : f32
    %5 = vector.broadcast %cst_3 : f32 to vector<8x1xf32>
    %6 = arith.maximumf %4, %5 : vector<8x1xf32>
    %7 = math.rsqrt %6 : vector<8x1xf32>
    %8 = vector.broadcast %7 : vector<8x1xf32> to vector<8x32xf32>
    %9 = arith.mulf %0, %8 : vector<8x32xf32>
    %10 = arith.mulf %1, %1 : vector<8x32xf32>
    %cst_4 = arith.constant dense<0.000000e+00> : vector<8xf32>
    %11 = vector.multi_reduction <add>, %10, %cst_4 [1] : vector<8x32xf32> to vector<8xf32>
    %12 = vector.shape_cast %11 : vector<8xf32> to vector<8x1xf32>
    %cst_5 = arith.constant 1.17549435E-38 : f32
    %13 = vector.broadcast %cst_5 : f32 to vector<8x1xf32>
    %14 = arith.maximumf %12, %13 : vector<8x1xf32>
    %15 = math.rsqrt %14 : vector<8x1xf32>
    %16 = vector.broadcast %15 : vector<8x1xf32> to vector<8x32xf32>
    %17 = arith.mulf %1, %16 : vector<8x32xf32>
    %18 = arith.truncf %9 : vector<8x32xf32> to vector<8x32xbf16>
    %19 = arith.truncf %17 : vector<8x32xf32> to vector<8x32xbf16>
    %cst_6 = arith.constant dense<0.000000e+00> : vector<8x8xf32>
    %20 = tpu.matmul %18, %19, %cst_6 {dimension_numbers = #tpu.dot_dimension_numbers<[1], [1], [0], [0], [0, 0, 1, 0], [], []>} : vector<8x32xbf16>, vector<8x32xbf16>, vector<8x8xf32> -> vector<8x8xf32>
    %c0_7 = arith.constant 0 : index
    %c0_8 = arith.constant 0 : index
    %21 = vector.load %arg4[%c0_7, %c0_8] : memref<8x8xf32, #tpu.memory_space<vmem>>, vector<8x8xf32>
    tpu.vector_store %arg4[%c0_7, %c0_8], %20 {strides = array<i32>} : memref<8x8xf32, #tpu.memory_space<vmem>>, vector<8x8xf32>,
    return
  }
  func.func @transform_0(%arg0: i32, %arg1: i32) -> (i32, i32) {
    %c0_i32 = arith.constant 0 : i32
    %c0_i32_0 = arith.constant 0 : i32
    return %arg0, %c0_i32 : i32, i32
  }
  func.func @transform_1(%arg0: i32, %arg1: i32) -> (i32, i32) {
    %c0_i32 = arith.constant 0 : i32
    %c0_i32_0 = arith.constant 0 : i32
    return %arg1, %c0_i32 : i32, i32
  }
  func.func @transform_2(%arg0: i32, %arg1: i32) -> (i32, i32) {
    %c0_i32 = arith.constant 0 : i32
    return %arg0, %arg1 : i32, i32
  }
}

</mosaic_0001>

<bundles_post_ra>
// kernel: tpu_custom_call.1
= control target key start
LH: loop header
LB: loop body
LE: loop exit
PB: predicated region body
PF: predicated region fallthrough
CT: control target
= control target key end

     0   :  { %7 = vsyncpa [#allocation3], 0  ;;  %s237_s0 = inlined_call_operand.hbm [shape: f32[8,32], index: 0, kind: input, shape index: {}]   ;;  %s238_s1 = inlined_call_operand.hbm [shape: f32[8,32], index: 1, kind: input, shape index: {}]   ;;  %s239_s2 = inlined_call_operand.hbm [shape: f32[8,8], index: 2, kind: output, shape index: {}]  }
   0x1   :  { %8 = vsyncpa [#allocation6], 0 }
   0x2   :  { %9 = vsyncpa [#allocation4], 0  ;;  %s204_s9 = smov [#allocation2]   ;;  %s205_s11 = smov [#allocation5]  }
   0x3   :  { %s16_s10 = sshll.u32 %s204_s9, 4  ;;  %s26_s12 = sshll.u32 %s205_s11, 4  ;;  %s17_s10 = int_to_ptr.vmem [resolvable:$true] %s16_s10  ;;  %s27_s12 = int_to_ptr.vmem [resolvable:$true] %s26_s12 }
   0x4   :  { %s146_s13 = scalar_lea.vmem %s17_s10, 128  ;;  %p151_p1 = scmp.lt.s32.totalorder %s17_s10, %s17_s10 }
   0x5   :  { %p147_p0 = scmp.ne.s32.totalorder %s17_s10, %s146_s13  ;;  %p152_p2 = scmp.lt.s32.totalorder %s146_s13, %s146_s13 }
   0x7   :  { %p153_p3 = por %p152_p2, %p151_p1 }
   0x9   :  { %p154_p4 = pnand %p153_p3, %p147_p0 }
   0xb   :  { %157 = shalt.err (!%p154_p4)
}
   0xc   :  { %19 = dma.hbm_to_vmem [thread:$0]  %s237_s0, 128, %s17_s10, [#allocation3]  }
   0xd   :  { %s166_s16 = scalar_lea.vmem %s27_s12, 128  ;;  %p171_p6 = scmp.lt.s32.totalorder %s27_s12, %s27_s12 }
   0xe   :  { %p167_p5 = scmp.ne.s32.totalorder %s27_s12, %s166_s16  ;;  %p172_p7 = scmp.lt.s32.totalorder %s166_s16, %s166_s16 }
  0x10   :  { %p173_p8 = por %p172_p7, %p171_p6 }
  0x12   :  { %p174_p9 = pnand %p173_p8, %p167_p5 }
  0x14   :  { %177 = shalt.err (!%p174_p9)
}
  0x15   :  { %29 = dma.hbm_to_vmem [thread:$0]  %s238_s1, 128, %s27_s12, [#allocation6]  }
  0x16   :  { %198 = dma.done.wait [#allocation3], 128  }
  0x17   :  { %199 = vsyncadd [#allocation3], 4294967168 }
  0x18   :  { %200 = dma.done.wait [#allocation6], 128  }
  0x19   :  { %201 = vsyncadd [#allocation6], 4294967168  ;;  %v38_v0 = vld [vmem:[#allocation5] sm:$0xff]  ;;  %vm40_vm0 = vcmask 261120   ;;  %v37_v1 = vld [vmem:[#allocation2] sm:$0xff]  ;;  %v206_v6 = vmov 0.0  }
  0x1a   :  { %v47_v2 = vmul.f32 %v38_v0, %v38_v0  ;;  %v39_v3 = vmul.f32 %v37_v1, %v37_v1  ;;  %123 = vmatprep.subr.bf16.mxu0 %v206_v6  ;;  %vm207_vm1 = vmmov 0   ;;  %s208_s0 = smov [#allocation7]   ;;  %vm102_vm2 = vcmask 64512  }
  0x1b   :  { %125 = vmatprep.mubr.msk.bf16.mxu0 %vm207_vm1, %v206_v6  ;;  %s110_s1 = sshll.u32 %s208_s0, 4  ;;  %s111_s1 = int_to_ptr.vmem [resolvable:$true] %s110_s1 }
  0x1c   :  { %v48_v4 = vsel %vm40_vm0, %v47_v2, 0.0  ;;  %v41_v5 = vsel %vm40_vm0, %v39_v3, 0.0  ;;  %s178_s19 = scalar_lea.vmem %s111_s1, 128  ;;  %p183_p11 = scmp.lt.s32.totalorder %s111_s1, %s111_s1 }
  0x1d   :  { %49 = vadd.xlane.f32.xlu0 %v48_v4  ;;  %p179_p10 = scmp.ne.s32.totalorder %s111_s1, %s178_s19  ;;  %p184_p12 = scmp.lt.s32.totalorder %s178_s19, %s178_s19 }
  0x1f   :  { %p185_p13 = por %p184_p12, %p183_p11 }
  0x21   :  { %42 = vadd.xlane.f32.xlu0 %v41_v5  ;;  %p186_p0 = pnand %p185_p13, %p179_p10 }
  0xa6   :  { %v50_v7 = vpop.xlane.xlu0 %49 }
  0xa7   :  { %v51_v8 = vmax.f32 %v50_v7, 1.1754944e-38 }
  0xa9   :  { %134 = vrsqrt.f32 %v51_v8 }
  0xaa   :  { %v43_v9 = vpop.xlane.xlu0 %42 }
  0xab   :  { %v44_v10 = vmax.f32 %v43_v9, 1.1754944e-38 }
  0xad   :  { %136 = vrsqrt.f32 %v44_v10 }
  0xb6   :  { %v135_v11 = vpop.eup %134 }
  0xb7   :  { %v53_v12 = vmul.f32 %v135_v11, %v38_v0 }
  0xb9   :  { %v55_v13 = vpack.c.bf16 %v53_v12, %v53_v12 }
  0xba   :  { %v137_v14 = vpop.eup %136 }
  0xbb   :  { %v60_v15 = vsel %vm40_vm0, %v55_v13, 0  ;;  %v46_v16 = vmul.f32 %v137_v14, %v37_v1 }
  0xbc   :  { %124 = vmatpush3.bf16.xpose.msra.mxu0 %v60_v15 }
  0xbd   :  { %v54_v17 = vpack.c.bf16 %v46_v16, %v46_v16 }
  0xc3   :  { %126 = vmatmul.mubr.msk.bf16.vlgmr.msra.gmra.mxu0 %vm40_vm0, %v54_v17 }
 0x183   :  { %v96_v18 = vpop.f32.mrf.mxu0 }
 0x184   :  { %103 = vst.msk [vmem:[#allocation7] sm:$0xff] %vm102_vm2, %v96_v18 }
 0x185   :  { %v127_v19 = vpop.f32.mrf.mxu0 }
 0x186   :  { %189 = shalt.err (!%p186_p0)
}
 0x187   :  { %113 = dma.vmem_to_hbm [thread:$0]  %s111_s1, 128, %s239_s2, [#allocation4]   ;;  %v99_v20 = vpop.f32.mrf.mxu0 }
 0x189   :  { %v128_v21 = vpop.f32.mrf.mxu0 }
 0x18a   :  { %202 = dma.done.wait [#allocation4], 128  }
 0x18b   :  { %203 = vsyncadd [#allocation4], 4294967168 }
 0x18c   :  { %117 = vsyncpa [#allocation3], 1 }
 0x18d   :  { %118 = vsyncpa [#allocation6], 1 }
 0x18e   :  { %119 = vsyncpa [#allocation4], 1 }

</bundles_post_ra>
